<compile_context>
chip_gen: v5e
topology: v5e:2x2
jax: 0.10.0
libtpu: 0.0.40
codegen_flags: <defaults>
</compile_context>

<pallas_src>
import functools

import jax
import jax.numpy as jnp
from jax.experimental import pallas as pl
from jax.experimental.pallas import tpu as pltpu


def _round_up(a, m):
    return ((a + m - 1) // m) * m


def _ffn_kernel(x_ref, w1_ref, b1_ref, w2_ref, b2_ref, w3_ref, b3_ref, o_ref,
                *, n_classes):
    # bf16 cast inside the kernel (binding slot is DMA; VPU cast is free).
    x = x_ref[...].astype(jnp.bfloat16)
    # Layer 1: x @ W1 + b1, ReLU   (bf16 operands, f32 accumulation on the MXU)
    h1 = jnp.dot(x, w1_ref[...], preferred_element_type=jnp.float32)
    h1 = jnp.maximum(h1 + b1_ref[...], 0.0).astype(jnp.bfloat16)
    # Layer 2: h1 @ W2 + b2, ReLU  (H2 padded to 128 => lane-dense)
    h2 = jnp.dot(h1, w2_ref[...], preferred_element_type=jnp.float32)
    h2 = jnp.maximum(h2 + b2_ref[...], 0.0).astype(jnp.bfloat16)
    # Output layer: lane-dense (128-col padded) matmul, then slice to the C real
    # columns before the store so HBM writeback is only (tile_m, C).
    out = jnp.dot(h2, w3_ref[...], preferred_element_type=jnp.float32)
    o_ref[...] = (out[:, :n_classes] + b3_ref[...]).astype(o_ref.dtype)


def feedforward_nn(x, params, *, tile_m=None):
    (w1, b1), (w2, b2), (w3, b3) = params
    N, F_in = x.shape
    H1 = w1.shape[1]
    H2 = w2.shape[1]
    C = w3.shape[1]

    # ---- Lane-dense hidden/output widths (zero-padded; weights are resident,
    #      so the padding costs zero HBM traffic and padded columns stay 0). ----
    H1p = _round_up(H1, 128)
    H2p = _round_up(H2, 128)
    Cp = _round_up(C, 128)
    w1p = jnp.zeros((F_in, H1p), w1.dtype).at[:, :H1].set(w1)
    b1p = jnp.zeros((1, H1p), jnp.float32).at[:, :H1].set(b1.astype(jnp.float32))
    w2p = jnp.zeros((H1p, H2p), w2.dtype).at[:H1, :H2].set(w2)
    b2p = jnp.zeros((1, H2p), jnp.float32).at[:, :H2].set(b2.astype(jnp.float32))
    w3p = jnp.zeros((H2p, Cp), w3.dtype).at[:H2, :C].set(w3)
    b3f = b3.astype(jnp.float32).reshape(1, C)

    # Resident weights stream once as bf16 (MXU-native); f32 accumulation in-kernel.
    w1_bf = w1p.astype(jnp.bfloat16)
    w2_bf = w2p.astype(jnp.bfloat16)
    w3_bf = w3p.astype(jnp.bfloat16)

    # ---- Row tile: multiple of 8 (sublane rule); for larger N use MXU-aligned
    #      multiples of 256 and guarantee >=2 grid steps (v7x has 2 TCs). ----
    if tile_m is None:
        if N <= 256:
            tile_m = _round_up(N, 8)
        else:
            tile_m = min(_round_up(pl.cdiv(N, 2), 256), 4096)
    grid = (pl.cdiv(N, tile_m),)

    # Constant index map => weights/biases DMA'd once and stay VMEM-resident.
    resident = lambda shape: pl.BlockSpec(shape, lambda i: (0, 0))

    kernel = functools.partial(_ffn_kernel, n_classes=C)

    out = pl.pallas_call(
        kernel,
        out_shape=jax.ShapeDtypeStruct((N, C), jnp.float32),
        grid_spec=pltpu.PrefetchScalarGridSpec(
            num_scalar_prefetch=0,
            grid=grid,
            in_specs=[
                pl.BlockSpec((tile_m, F_in), lambda i: (i, 0)),   # x row tile streams
                resident(w1_bf.shape), resident(b1p.shape),
                resident(w2_bf.shape), resident(b2p.shape),
                resident(w3_bf.shape), resident(b3f.shape),
            ],
            out_specs=pl.BlockSpec((tile_m, C), lambda i: (i, 0)),  # only real cols hit HBM
        ),
        compiler_params=pltpu.CompilerParams(
            dimension_semantics=("parallel",),        # row tiles shard across TCs (v7x)
            vmem_limit_bytes=48 * 1024 * 1024,        # headroom vs. 64 MiB v7x VMEM
        ),
    )(x, w1_bf, b1p, w2_bf, b2p, w3_bf, b3f)

    return out


def init_params(key, ft_in, nb_classes, hidden_sizes=(128, 64)):
    """Deterministic glorot-ish init; weights [F_in, F_out], biases [1, F_out]."""
    params = []
    prev = ft_in
    sizes = list(hidden_sizes) + [nb_classes]
    for size in sizes:
        key, kw = jax.random.split(key)
        scale = (2.0 / (prev + size)) ** 0.5
        w = scale * jax.random.normal(kw, (prev, size), dtype=jnp.float32)
        b = jnp.zeros((1, size), dtype=jnp.float32)
        params.append((w, b))
        prev = size
    return params


def reference_ffn_bf16(x, params):
    """Pure-JAX reference mirroring the kernel's bf16-operand / f32-accum math."""
    (w1, b1), (w2, b2), (w3, b3) = params
    h = jnp.dot(x.astype(jnp.bfloat16), w1.astype(jnp.bfloat16),
                preferred_element_type=jnp.float32) + b1
    h = jnp.maximum(h, 0.0).astype(jnp.bfloat16)
    h = jnp.dot(h, w2.astype(jnp.bfloat16),
                preferred_element_type=jnp.float32) + b2
    h = jnp.maximum(h, 0.0).astype(jnp.bfloat16)
    return jnp.dot(h, w3.astype(jnp.bfloat16),
                   preferred_element_type=jnp.float32) + b3


if __name__ == "__main__":
    key = jax.random.PRNGKey(0)
    kx, kp = jax.random.split(key)

    N, FT_IN, NB_CLASSES = 16, 32, 8            # small shapes
    x = jax.random.normal(kx, (N, FT_IN), dtype=jnp.float32)
    params = init_params(kp, FT_IN, NB_CLASSES, hidden_sizes=(128, 64))

    out = feedforward_nn(x, params)
    out = jax.block_until_ready(out)

    ref = reference_ffn_bf16(x, params)
    assert out.shape == (N, NB_CLASSES)
    assert jnp.allclose(out, ref, atol=1e-2, rtol=1e-2)

    print("KERNEL_OK")
</pallas_src>

<mosaic_0001>
module attributes {stable_mosaic.version = 11 : i64} {
  func.func @_ffn_kernel(%arg0: i32, %arg1: memref<16x32xf32, #tpu.memory_space<vmem>>, %arg2: memref<32x128xbf16, #tpu.memory_space<vmem>>, %arg3: memref<1x128xf32, #tpu.memory_space<vmem>>, %arg4: memref<128x128xbf16, #tpu.memory_space<vmem>>, %arg5: memref<1x128xf32, #tpu.memory_space<vmem>>, %arg6: memref<128x128xbf16, #tpu.memory_space<vmem>>, %arg7: memref<1x8xf32, #tpu.memory_space<vmem>>, %arg8: memref<16x8xf32, #tpu.memory_space<vmem>>) attributes {dimension_semantics = [#tpu.dimension_semantics<parallel>], iteration_bounds = array<i64: 1>, scalar_prefetch = 0 : i64, scratch_operands = 0 : i64, tpu.core_type = #tpu.core_type<tc>, window_params = [{transform_indices = @transform_0, window_bounds = array<i64: 16, 32>}, {pipeline_mode = #tpu.pipeline_mode<synchronous>, transform_indices = @transform_1, window_bounds = array<i64: 32, 128>}, {pipeline_mode = #tpu.pipeline_mode<synchronous>, transform_indices = @transform_2, window_bounds = array<i64: 1, 128>}, {pipeline_mode = #tpu.pipeline_mode<synchronous>, transform_indices = @transform_3, window_bounds = array<i64: 128, 128>}, {pipeline_mode = #tpu.pipeline_mode<synchronous>, transform_indices = @transform_4, window_bounds = array<i64: 1, 128>}, {pipeline_mode = #tpu.pipeline_mode<synchronous>, transform_indices = @transform_5, window_bounds = array<i64: 128, 128>}, {pipeline_mode = #tpu.pipeline_mode<synchronous>, transform_indices = @transform_6, window_bounds = array<i64: 1, 8>}, {transform_indices = @transform_7, window_bounds = array<i64: 16, 8>}]} {
    %c0 = arith.constant 0 : index
    %c0_0 = arith.constant 0 : index
    %0 = vector.load %arg1[%c0, %c0_0] : memref<16x32xf32, #tpu.memory_space<vmem>>, vector<16x32xf32>
    %1 = arith.truncf %0 : vector<16x32xf32> to vector<16x32xbf16>
    %c0_1 = arith.constant 0 : index
    %c0_2 = arith.constant 0 : index
    %2 = vector.load %arg2[%c0_1, %c0_2] : memref<32x128xbf16, #tpu.memory_space<vmem>>, vector<32x128xbf16>
    %cst = arith.constant dense<0.000000e+00> : vector<16x128xf32>
    %3 = tpu.matmul %1, %2, %cst {dimension_numbers = #tpu.dot_dimension_numbers<[1], [0], [0], [1], [0, 0, 1, 1], [], []>} : vector<16x32xbf16>, vector<32x128xbf16>, vector<16x128xf32> -> vector<16x128xf32>
    %c0_3 = arith.constant 0 : index
    %c0_4 = arith.constant 0 : index
    %4 = vector.load %arg3[%c0_3, %c0_4] : memref<1x128xf32, #tpu.memory_space<vmem>>, vector<1x128xf32>
    %5 = vector.broadcast %4 : vector<1x128xf32> to vector<16x128xf32>
    %6 = arith.addf %3, %5 : vector<16x128xf32>
    %cst_5 = arith.constant 0.000000e+00 : f32
    %7 = vector.broadcast %cst_5 : f32 to vector<16x128xf32>
    %8 = arith.maximumf %6, %7 : vector<16x128xf32>
    %9 = arith.truncf %8 : vector<16x128xf32> to vector<16x128xbf16>
    %c0_6 = arith.constant 0 : index
    %c0_7 = arith.constant 0 : index
    %10 = vector.load %arg4[%c0_6, %c0_7] : memref<128x128xbf16, #tpu.memory_space<vmem>>, vector<128x128xbf16>
    %cst_8 = arith.constant dense<0.000000e+00> : vector<16x128xf32>
    %11 = tpu.matmul %9, %10, %cst_8 {dimension_numbers = #tpu.dot_dimension_numbers<[1], [0], [0], [1], [0, 0, 1, 1], [], []>} : vector<16x128xbf16>, vector<128x128xbf16>, vector<16x128xf32> -> vector<16x128xf32>
    %c0_9 = arith.constant 0 : index
    %c0_10 = arith.constant 0 : index
    %12 = vector.load %arg5[%c0_9, %c0_10] : memref<1x128xf32, #tpu.memory_space<vmem>>, vector<1x128xf32>
    %13 = vector.broadcast %12 : vector<1x128xf32> to vector<16x128xf32>
    %14 = arith.addf %11, %13 : vector<16x128xf32>
    %cst_11 = arith.constant 0.000000e+00 : f32
    %15 = vector.broadcast %cst_11 : f32 to vector<16x128xf32>
    %16 = arith.maximumf %14, %15 : vector<16x128xf32>
    %17 = arith.truncf %16 : vector<16x128xf32> to vector<16x128xbf16>
    %c0_12 = arith.constant 0 : index
    %c0_13 = arith.constant 0 : index
    %18 = vector.load %arg6[%c0_12, %c0_13] : memref<128x128xbf16, #tpu.memory_space<vmem>>, vector<128x128xbf16>
    %cst_14 = arith.constant dense<0.000000e+00> : vector<16x128xf32>
    %19 = tpu.matmul %17, %18, %cst_14 {dimension_numbers = #tpu.dot_dimension_numbers<[1], [0], [0], [1], [0, 0, 1, 1], [], []>} : vector<16x128xbf16>, vector<128x128xbf16>, vector<16x128xf32> -> vector<16x128xf32>
    %20 = vector.extract_strided_slice %19 {offsets = [0, 0], sizes = [16, 8], strides = [1, 1]} : vector<16x128xf32> to vector<16x8xf32>
    %c0_15 = arith.constant 0 : index
    %c0_16 = arith.constant 0 : index
    %21 = vector.load %arg7[%c0_15, %c0_16] : memref<1x8xf32, #tpu.memory_space<vmem>>, vector<1x8xf32>
    %22 = vector.broadcast %21 : vector<1x8xf32> to vector<16x8xf32>
    %23 = arith.addf %20, %22 : vector<16x8xf32>
    %c0_17 = arith.constant 0 : index
    %c0_18 = arith.constant 0 : index
    %24 = vector.load %arg8[%c0_17, %c0_18] : memref<16x8xf32, #tpu.memory_space<vmem>>, vector<16x8xf32>
    tpu.vector_store %arg8[%c0_17, %c0_18], %23 {strides = array<i32>} : memref<16x8xf32, #tpu.memory_space<vmem>>, vector<16x8xf32>,
    return
  }
  func.func @transform_0(%arg0: i32) -> (i32, i32) {
    %c0_i32 = arith.constant 0 : i32
    %c0_i32_0 = arith.constant 0 : i32
    return %arg0, %c0_i32 : i32, i32
  }
  func.func @transform_1(%arg0: i32) -> (i32, i32) {
    %c0_i32 = arith.constant 0 : i32
    %c0_i32_0 = arith.constant 0 : i32
    %c0_i32_1 = arith.constant 0 : i32
    return %c0_i32, %c0_i32_0 : i32, i32
  }
  func.func @transform_2(%arg0: i32) -> (i32, i32) {
    %c0_i32 = arith.constant 0 : i32
    %c0_i32_0 = arith.constant 0 : i32
    %c0_i32_1 = arith.constant 0 : i32
    return %c0_i32, %c0_i32_0 : i32, i32
  }
  func.func @transform_3(%arg0: i32) -> (i32, i32) {
    %c0_i32 = arith.constant 0 : i32
    %c0_i32_0 = arith.constant 0 : i32
    %c0_i32_1 = arith.constant 0 : i32
    return %c0_i32, %c0_i32_0 : i32, i32
  }
  func.func @transform_4(%arg0: i32) -> (i32, i32) {
    %c0_i32 = arith.constant 0 : i32
    %c0_i32_0 = arith.constant 0 : i32
    %c0_i32_1 = arith.constant 0 : i32
    return %c0_i32, %c0_i32_0 : i32, i32
  }
  func.func @transform_5(%arg0: i32) -> (i32, i32) {
    %c0_i32 = arith.constant 0 : i32
    %c0_i32_0 = arith.constant 0 : i32
    %c0_i32_1 = arith.constant 0 : i32
    return %c0_i32, %c0_i32_0 : i32, i32
  }
  func.func @transform_6(%arg0: i32) -> (i32, i32) {
    %c0_i32 = arith.constant 0 : i32
    %c0_i32_0 = arith.constant 0 : i32
    %c0_i32_1 = arith.constant 0 : i32
    return %c0_i32, %c0_i32_0 : i32, i32
  }
  func.func @transform_7(%arg0: i32) -> (i32, i32) {
    %c0_i32 = arith.constant 0 : i32
    %c0_i32_0 = arith.constant 0 : i32
    return %arg0, %c0_i32 : i32, i32
  }
}

</mosaic_0001>

<bundles_post_ra>
// kernel: tpu_custom_call.1
= control target key start
LH: loop header
LB: loop body
LE: loop exit
PB: predicated region body
PF: predicated region fallthrough
CT: control target
= control target key end

     0   :  { %12 = vsyncpa [#allocation3], 0  ;;  %s592_s0 = inlined_call_operand.hbm [shape: f32[16,32], index: 0, kind: input, shape index: {}]   ;;  %s593_s1 = inlined_call_operand.hbm [shape: bf16[32,128], index: 1, kind: input, shape index: {}]   ;;  %s594_s2 = inlined_call_operand.vmem [shape: f32[1,128], index: 2, kind: input, shape index: {}]   ;;  %s595_s3 = inlined_call_operand.hbm [shape: bf16[128,128], index: 3, kind: input, shape index: {}]   ;;  %s596_s4 = inlined_call_operand.vmem [shape: f32[1,128], index: 4, kind: input, shape index: {}]   ;;  %s597_s5 = inlined_call_operand.hbm [shape: bf16[128,128], index: 5, kind: input, shape index: {}]   ;;  %s598_s6 = inlined_call_operand.vmem [shape: f32[1,8], index: 6, kind: input, shape index: {}]   ;;  %s599_s7 = inlined_call_operand.vmem [shape: f32[16,8], index: 7, kind: output, shape index: {}]  }
   0x1   :  { %13 = vsyncpa [#allocation5], 0  ;;  %s32_s26 = sshll.u32 %s593_s1, 4  ;;  %s33_s26 = int_to_ptr.hbm [resolvable:$true] %s32_s26 }
   0x2   :  { %14 = vsyncpa [#allocation8], 0  ;;  %s517_s27 = smov [#allocation4]   ;;  %s19_s8 = sshll.u32 %s592_s0, 4  ;;  %s20_s8 = int_to_ptr.hbm [resolvable:$true] %s19_s8 }
   0x3   :  { %s34_s28 = sshll.u32 %s517_s27, 4  ;;  %s518_s9 = smov 64   ;;  %s35_s28 = int_to_ptr.vmem [resolvable:$true] %s34_s28 }
   0x4   :  { %s519_s10 = smov 4   ;;  %s520_s11 = smov [#allocation2]  }
   0x5   :  { %40 = dma.hbm_to_vmem [thread:$0]  %s33_s26, 256, %s35_s28, [#allocation5], %s518_s9, %s518_s9, %s519_s10  }
   0x6   :  { %s21_s12 = sshll.u32 %s520_s11, 4  ;;  %s521_s13 = smov 128   ;;  %s22_s12 = int_to_ptr.vmem [resolvable:$true] %s21_s12 }
   0x7   :  { %s522_s14 = smov 8   ;;  %s47_s16 = sshll.u32 %s595_s3, 4  ;;  %s48_s16 = int_to_ptr.hbm [resolvable:$true] %s47_s16 }
   0x8   :  { %27 = dma.hbm_to_vmem [thread:$0]  %s20_s8, 256, %s22_s12, [#allocation3], %s521_s13, %s521_s13, %s522_s14  }
   0x9   :  { %s523_s17 = smov [#allocation6]   ;;  %s62_s20 = sshll.u32 %s597_s5, 4  ;;  %s63_s20 = int_to_ptr.hbm [resolvable:$true] %s62_s20 }
   0xa   :  { %s49_s18 = sshll.u32 %s523_s17, 4  ;;  %s524_s21 = smov [#allocation7]   ;;  %s50_s18 = int_to_ptr.vmem [resolvable:$true] %s49_s18 }
   0xb   :  { %55 = dma.hbm_to_vmem [thread:$0]  %s48_s16, 1024, %s50_s18, [#allocation5], %s518_s9, %s518_s9, %s519_s10  }
   0xc   :  { %s64_s22 = sshll.u32 %s524_s21, 4  ;;  %s65_s22 = int_to_ptr.vmem [resolvable:$true] %s64_s22 }
   0xd   :  { %70 = dma.hbm_to_vmem [thread:$0]  %s63_s20, 1024, %s65_s22, [#allocation8], %s518_s9, %s518_s9, %s519_s10  }
   0xe   :  { %511 = dma.done.wait [#allocation3], 256  }
   0xf   :  { %512 = vsyncadd [#allocation3], 4294967040 }
  0x10   :  { %513 = dma.done.wait [#allocation5], 1280  }
  0x11   :  { %514 = vsyncadd [#allocation5], 4294966016 }
  0x12   :  { %515 = dma.done.wait [#allocation8], 1024  }
  0x13   :  { %516 = vsyncadd [#allocation8], 4294966272  ;;  %v387_v0 = vld [vmem:[#allocation4 + $0x8] sm:$0xff]  ;;  %v386_v1 = vld [vmem:[#allocation4] sm:$0xff]  ;;  %vm113_vm0 = vcmask 261120   ;;  %vm303_vm1 = vcmask 64512  }
  0x14   :  { %v395_v2 = vld [vmem:[#allocation6 + $0x38] sm:$0xff]  ;;  %123 = vmatpush.bf16.msra.mxu0 %v387_v0  ;;  %v90_v3 = vld [vmem:[#allocation2] sm:$0xff]  ;;  %v91_v4 = vld [vmem:[#allocation2 + $0x8] sm:$0xff] }
  0x15   :  { %202 = vmatpush.bf16.msra.mxu1 %v395_v2  ;;  %v394_v5 = vld [vmem:[#allocation6 + $0x30] sm:$0xff]  ;;  %v92_v6 = vpack.c.bf16 %v91_v4, %v90_v3  ;;  %v393_v7 = vld [vmem:[#allocation6 + $0x28] sm:$0xff]  ;;  %v392_v8 = vld [vmem:[#allocation6 + $0x20] sm:$0xff] }
  0x16   :  { %v391_v9 = vld [vmem:[#allocation6 + $0x18] sm:$0xff]  ;;  %v390_v10 = vld [vmem:[#allocation6 + $0x10] sm:$0xff]  ;;  %v389_v11 = vld [vmem:[#allocation6 + $0x8] sm:$0xff] }
  0x17   :  { %v388_v12 = vld [vmem:[#allocation6] sm:$0xff]  ;;  %v403_v13 = vld [vmem:[#allocation7 + $0x38] sm:$0xff]  ;;  %v402_v14 = vld [vmem:[#allocation7 + $0x30] sm:$0xff] }
  0x18   :  { %124 = vmatpush.bf16.msra.mxu0 %v386_v1  ;;  %283 = vmatpush.bf16.msra.mxu2 %v403_v13  ;;  %v401_v15 = vld [vmem:[#allocation7 + $0x28] sm:$0xff]  ;;  %v400_v16 = vld [vmem:[#allocation7 + $0x20] sm:$0xff]  ;;  %v399_v25 = vld [vmem:[#allocation7 + $0x18] sm:$0xff] }
  0x19   :  { %203 = vmatpush.bf16.msra.mxu1 %v394_v5  ;;  %v412_v18 = vld [vmem:[%s594_s2] ss:$0 sm:$0xff]  ;;  %v398_v26 = vld [vmem:[#allocation7 + $0x10] sm:$0xff]  ;;  %v397_v27 = vld [vmem:[#allocation7 + $0x8] sm:$0xff] }
  0x1a   :  { %v396_v28 = vld [vmem:[#allocation7] sm:$0xff] }
  0x1b   :  { %321 = vmatmul.msk.bf16.vlgmr.msra.gmra.mxu0 %vm113_vm0, %v92_v6  ;;  %v413_v30 = vld [vmem:[%s596_s4] ss:$0 sm:$0xff] }
  0x1c   :  { %284 = vmatpush.bf16.msra.mxu2 %v402_v14  ;;  %v414_v37 = vld [vmem:[%s598_s6] ss:$0 sm:$0xff] }
  0x1d   :  { %204 = vmatpush.bf16.msra.mxu1 %v393_v7 }
  0x20   :  { %285 = vmatpush.bf16.msra.mxu2 %v401_v15 }
  0x21   :  { %205 = vmatpush.bf16.msra.mxu1 %v392_v8 }
  0x24   :  { %286 = vmatpush.bf16.msra.mxu2 %v400_v16 }
  0x25   :  { %206 = vmatpush.bf16.msra.mxu1 %v391_v9 }
  0x28   :  { %287 = vmatpush.bf16.msra.mxu2 %v399_v25 }
  0x29   :  { %207 = vmatpush.bf16.msra.mxu1 %v390_v10 }
  0x2c   :  { %288 = vmatpush.bf16.msra.mxu2 %v398_v26 }
  0x2d   :  { %208 = vmatpush.bf16.msra.mxu1 %v389_v11 }
  0x30   :  { %289 = vmatpush.bf16.msra.mxu2 %v397_v27 }
  0x31   :  { %209 = vmatpush.bf16.msra.mxu1 %v388_v12 }
  0x34   :  { %290 = vmatpush.bf16.msra.mxu2 %v396_v28 }
  0x98   :  { %v126_v17 = vpop.f32.mrf.mxu0 }
  0x99   :  { %v127_v19 = vadd.f32 %v412_v18, %v126_v17 }
  0x9b   :  { %v131_v22 = vmax.f32 %v127_v19, 0.0 }
  0xa0   :  { %v128_v20 = vpop.f32.mrf.mxu0 }
  0xa1   :  { %v129_v21 = vadd.f32 %v412_v18, %v128_v20 }
  0xa3   :  { %v132_v23 = vmax.f32 %v129_v21, 0.0 }
  0xa5   :  { %v133_v24 = vpack.c.bf16 %v132_v23, %v131_v22 }
  0xa7   :  { %210 = vmatmul.bf16.vlgmr.msra.gmra.mxu1 %v133_v24 }
 0x124   :  { %v211_v29 = vpop.f32.mrf.mxu1 }
 0x125   :  { %v212_v31 = vadd.f32 %v413_v30, %v211_v29 }
 0x127   :  { %v216_v34 = vmax.f32 %v212_v31, 0.0 }
 0x12c   :  { %v213_v32 = vpop.f32.mrf.mxu1 }
 0x12d   :  { %v214_v33 = vadd.f32 %v413_v30, %v213_v32 }
 0x12f   :  { %v217_v35 = vmax.f32 %v214_v33, 0.0 }
 0x131   :  { %v218_v36 = vpack.c.bf16 %v217_v35, %v216_v34 }
 0x133   :  { %291 = vmatmul.bf16.vlgmr.msra.gmra.mxu2 %v218_v36 }
 0x1b6   :  { %v292_v38 = vpop.f32.mrf.mxu2 }
 0x1b7   :  { %v301_v39 = vadd.f32 %v414_v37, %v292_v38 }
 0x1b9   :  { %304 = vst.msk [vmem:[%s599_s7] sm:$0xff] %vm303_vm1, %v301_v39 }
 0x1be   :  { %v294_v40 = vpop.f32.mrf.mxu2 }
 0x1bf   :  { %v302_v41 = vadd.f32 %v414_v37, %v294_v40 }
 0x1c1   :  { %305 = vst.msk [vmem:[%s599_s7 + $0x8] sm:$0xff] %vm303_vm1, %v302_v41 }
 0x1c2   :  { %310 = vsyncpa [#allocation3], 1 }
 0x1c3   :  { %311 = vsyncpa [#allocation5], 1 }
 0x1c4   :  { %312 = vsyncpa [#allocation8], 1 }

</bundles_post_ra>
